<compile_context>
chip_gen: v7x
topology: tpu7x:2x2x1
jax: 0.10.0
libtpu: 0.0.40
codegen_flags: <defaults>
</compile_context>

<pallas_src>
import jax
import jax.numpy as jnp
from jax import lax
from jax.experimental import pallas as pl
from jax.experimental.pallas import tpu as pltpu

LANE = 128


def _round_up(x, m):
    return ((x + m - 1) // m) * m


def _pad2(a, rows, cols):
    r, c = a.shape
    return jnp.pad(a, ((0, rows - r), (0, cols - c)))


# ----------------------------------------------------------------------------
# Fused kernel: single grid step, in-kernel (fully unrolled) conv loop.
# ----------------------------------------------------------------------------
def _fused_kernel(x0_ref, adj_ref, d0_ref, w_ms_ref, wq_ref, w_kv_ref,
                  x_out_ref, d_out_ref):
    bf16 = jnp.bfloat16
    f32 = jnp.float32

    hp = x0_ref.shape[1]
    dkp = wq_ref.shape[1]
    n_conv = w_ms_ref.shape[0]

    # Hoisted loop invariants (cast once; adj is 0/1 so bf16 is exact).
    adj = adj_ref[...].astype(bf16)
    wq = wq_ref[...]            # bf16, 1/sqrt(d_key) already folded in
    w_kv = w_kv_ref[...]        # bf16, [Wk | Wv] along lanes

    x = x0_ref[...]             # f32 [N, Hp]  (result of the hoisted Linear)
    d = d0_ref[...]             # f32 [M, Hp]

    # n_conv is small and static -> fully unrolled loop, constant weight index.
    for i in range(n_conv):
        # ---- ConvNetLayer / InteractionBlock (scalar path), unshared W -----
        # One fused [N,Hp] x [Hp,2Hp] matmul gives message + self terms.
        ms = jnp.dot(x.astype(bf16), w_ms_ref[i], preferred_element_type=f32)
        msg = ms[:, :hp]                      # lane-aligned slice (multiple of 128)
        self_term = ms[:, hp:]
        agg = jnp.dot(adj, msg.astype(bf16), preferred_element_type=f32)
        h = agg + self_term
        # silu in f32 with exact sigmoid (tiny tensor; keeps error from
        # compounding across conv layers).
        x = h * (1.0 / (1.0 + jnp.exp(-h)))

        # ---- DummyNodes: dummy atoms attend over real node features --------
        # One fused [N,Hp] x [Hp,dkp+Hp] matmul gives keys + values.
        kv = jnp.dot(x.astype(bf16), w_kv, preferred_element_type=f32)
        k = kv[:, :dkp]
        v = kv[:, dkp:]
        q = jnp.dot(d.astype(bf16), wq, preferred_element_type=f32)
        # q @ k^T without materializing a transpose: contract last dims.
        s = lax.dot_general(q.astype(bf16), k.astype(bf16),
                            (((1,), (1,)), ((), ())),
                            preferred_element_type=f32)      # [M, N]
        # N is never padded here, so no key mask is needed (see TODO above).
        s = s - jnp.max(s, axis=-1, keepdims=True)
        p = jnp.exp(s)
        p = p / jnp.sum(p, axis=-1, keepdims=True)           # exact f32 divide
        d = jnp.dot(p.astype(bf16), v.astype(bf16), preferred_element_type=f32)

    x_out_ref[...] = x
    d_out_ref[...] = d


def _fused_forward(x_in, adj, d_p, w_lin, w_ms, wq, w_kv):
    # Hoisted initial e3nn Linear (plain XLA around the custom call).
    x0 = jnp.dot(x_in.astype(jnp.bfloat16), w_lin,
                 preferred_element_type=jnp.float32)          # [N, Hp] f32

    n, hp = x0.shape
    m = d_p.shape[0]
    nc = w_ms.shape[0]
    dkp = wq.shape[1]

    flops_per_conv = 2 * (n * hp * 2 * hp          # x @ [Wmsg|Wself]
                          + n * n * hp             # adj @ msg
                          + n * hp * (dkp + hp)    # x @ [Wk|Wv]
                          + m * hp * dkp           # d @ Wq
                          + m * dkp * n            # q @ k^T
                          + m * n * hp)            # p @ v
    cost = pl.CostEstimate(
        flops=nc * flops_per_conv,
        transcendentals=nc * (n * hp + m * n),
        bytes_accessed=(x0.size + adj.size + d_p.size) * 4
                       + (w_ms.size + wq.size + w_kv.size) * 2
                       + (n * hp + m * hp) * 4,
    )

    grid_spec = pltpu.PrefetchScalarGridSpec(
        num_scalar_prefetch=0,
        grid=(1,),   # whole weight stack VMEM-resident; conv loop is in-kernel
        in_specs=[
            pl.BlockSpec((n, hp), lambda i: (0, 0)),            # x0
            pl.BlockSpec((n, n), lambda i: (0, 0)),             # adj
            pl.BlockSpec((m, hp), lambda i: (0, 0)),            # dummy feats
            pl.BlockSpec((nc, hp, 2 * hp), lambda i: (0, 0, 0)),  # [Wmsg|Wself]
            pl.BlockSpec((hp, dkp), lambda i: (0, 0)),          # Wq
            pl.BlockSpec((hp, dkp + hp), lambda i: (0, 0)),     # [Wk|Wv]
        ],
        out_specs=[
            pl.BlockSpec((n, hp), lambda i: (0, 0)),            # x out
            pl.BlockSpec((m, hp), lambda i: (0, 0)),            # d out
        ],
    )

    return pl.pallas_call(
        _fused_kernel,
        out_shape=(jax.ShapeDtypeStruct((n, hp), jnp.float32),
                   jax.ShapeDtypeStruct((m, hp), jnp.float32)),
        grid_spec=grid_spec,
        compiler_params=pltpu.CompilerParams(
            dimension_semantics=("arbitrary",),
            vmem_limit_bytes=32 * 1024 * 1024),
        cost_estimate=cost,
    )(x0, adj, d_p, w_ms, wq, w_kv)


_fused_forward_jit = jax.jit(_fused_forward)


# ----------------------------------------------------------------------------
# Module wrapper
# ----------------------------------------------------------------------------
class NxConvNetLayersUnsharedWithDummyAtomsPallas:
    """Deterministically-initialized JAX/Pallas version of the PyTorch module."""

    def __init__(self, key, f_in, hidden, n_convolutions, n_dummy, d_key):
        assert n_convolutions >= 1
        self.n_convolutions = n_convolutions
        self.f_in = f_in
        self.hidden = hidden
        self.d_key = d_key

        self.hidden_p = _round_up(hidden, LANE)
        self.d_key_p = _round_up(d_key, LANE)

        keys = jax.random.split(key, 4 + 2 * n_convolutions)

        def init(k, shape):
            fan_in = shape[0]
            return (jax.random.normal(k, shape, jnp.float32)
                    / jnp.sqrt(jnp.float32(fan_in)))

        bf16 = jnp.bfloat16

        # self.linear : irreps_in -> feature_irreps_hidden (hoisted to XLA;
        # only the output dim is lane-padded).
        self.w_lin = jnp.pad(
            init(keys[0], (f_in, hidden)),
            ((0, 0), (0, self.hidden_p - hidden))).astype(bf16)

        # unshared convnets (ModuleList); message|self fused along the lane
        # axis -> stacked [n_conv, Hp, 2*Hp] bf16.
        stacks = []
        for i in range(n_convolutions):
            wm = _pad2(init(keys[1 + 2 * i], (hidden, hidden)),
                       self.hidden_p, self.hidden_p)
            ws = _pad2(init(keys[2 + 2 * i], (hidden, hidden)),
                       self.hidden_p, self.hidden_p)
            stacks.append(jnp.concatenate([wm, ws], axis=1))
        self.w_ms = jnp.stack(stacks).astype(bf16)

        # single shared dummy_layer (query/key/value); 1/sqrt(d_key) folded
        # into Wq; key|value fused along lanes -> [Hp, dkp+Hp].
        base = 1 + 2 * n_convolutions
        scale = 1.0 / float(d_key) ** 0.5
        wq = _pad2(init(keys[base + 0], (hidden, d_key)) * scale,
                   self.hidden_p, self.d_key_p)
        wk = _pad2(init(keys[base + 1], (hidden, d_key)),
                   self.hidden_p, self.d_key_p)
        wv = _pad2(init(keys[base + 2], (hidden, hidden)),
                   self.hidden_p, self.hidden_p)
        self.wq = wq.astype(bf16)
        self.w_kv = jnp.concatenate([wk, wv], axis=1).astype(bf16)

    def __call__(self, data):
        x = data["node_features"].astype(jnp.float32)          # [N, F_in]
        adj = data["adjacency"].astype(jnp.float32)             # [N, N]
        d = data["dummy_node_features"].astype(jnp.float32)     # [M, H]
        m = d.shape[0]
        d_p = _pad2(d, m, self.hidden_p)

        x_out, d_out = _fused_forward_jit(
            x, adj, d_p, self.w_lin, self.w_ms, self.wq, self.w_kv)

        out = dict(data)
        out["node_features"] = x_out[:, :self.hidden]
        out["dummy_node_features"] = d_out[:, :self.hidden]
        return out


# ----------------------------------------------------------------------------
# Pure-JAX reference (mirrors the kernel's bf16 dot boundaries exactly)
# ----------------------------------------------------------------------------
def _reference_forward(module, x, adj, d):
    bf16, f32 = jnp.bfloat16, jnp.float32
    hp = module.hidden_p
    dkp = module.d_key_p

    d_p = _pad2(d.astype(f32), d.shape[0], hp)
    adj_bf = adj.astype(bf16)

    xh = jnp.dot(x.astype(bf16), module.w_lin, preferred_element_type=f32)
    dh = d_p
    for i in range(module.n_convolutions):
        ms = jnp.dot(xh.astype(bf16), module.w_ms[i], preferred_element_type=f32)
        msg, self_term = ms[:, :hp], ms[:, hp:]
        h = jnp.dot(adj_bf, msg.astype(bf16), preferred_element_type=f32) + self_term
        xh = h * jax.nn.sigmoid(h)
        kv = jnp.dot(xh.astype(bf16), module.w_kv, preferred_element_type=f32)
        k, v = kv[:, :dkp], kv[:, dkp:]
        q = jnp.dot(dh.astype(bf16), module.wq, preferred_element_type=f32)
        s = jnp.dot(q.astype(bf16), k.astype(bf16).T, preferred_element_type=f32)
        p = jax.nn.softmax(s, axis=-1)
        dh = jnp.dot(p.astype(bf16), v.astype(bf16), preferred_element_type=f32)
    return xh[:, :module.hidden], dh[:, :module.hidden]


# ----------------------------------------------------------------------------
# Demo
# ----------------------------------------------------------------------------
if __name__ == "__main__":
    N = 16          # real atoms
    M = 4           # dummy atoms
    F_IN = 8        # input node-feature irreps (scalars)
    HIDDEN = 32     # feature_irreps_hidden (scalars)
    D_KEY = 16      # irreps_key / irreps_query dim
    N_CONV = 2      # n_convolutions

    root = jax.random.PRNGKey(0)
    k_mod, k_x, k_d, k_adj = jax.random.split(root, 4)

    module = NxConvNetLayersUnsharedWithDummyAtomsPallas(
        k_mod, F_IN, HIDDEN, N_CONV, M, D_KEY
    )

    x = jax.random.normal(k_x, (N, F_IN), jnp.float32)
    d = jax.random.normal(k_d, (M, HIDDEN), jnp.float32)
    adj = (jax.random.uniform(k_adj, (N, N)) < 0.3).astype(jnp.float32)
    adj = adj * (1.0 - jnp.eye(N, dtype=jnp.float32))   # no self-loops

    data = {
        "node_features": x,
        "adjacency": adj,
        "dummy_node_features": d,
    }

    out = module(data)
    jax.block_until_ready(out["node_features"])
    jax.block_until_ready(out["dummy_node_features"])

    assert out["node_features"].shape == (N, HIDDEN)
    assert out["dummy_node_features"].shape == (M, HIDDEN)

    # correctness check against a pure-JAX reference using identical bf16
    # dot boundaries (loose-ish tol for exp/sigmoid lowering differences).
    x_ref, d_ref = _reference_forward(module, x, adj, d)
    assert jnp.allclose(out["node_features"], x_ref, rtol=2e-2, atol=2e-2)
    assert jnp.allclose(out["dummy_node_features"], d_ref, rtol=2e-2, atol=2e-2)

    print("KERNEL_OK")
</pallas_src>

<mosaic_0001>
module attributes {stable_mosaic.version = 11 : i64} {
  func.func @_fused_kernel(%arg0: i32, %arg1: memref<16x128xf32, #tpu.memory_space<vmem>>, %arg2: memref<16x16xf32, #tpu.memory_space<vmem>>, %arg3: memref<4x128xf32, #tpu.memory_space<vmem>>, %arg4: memref<2x128x256xbf16, #tpu.memory_space<vmem>>, %arg5: memref<128x128xbf16, #tpu.memory_space<vmem>>, %arg6: memref<128x256xbf16, #tpu.memory_space<vmem>>, %arg7: memref<16x128xf32, #tpu.memory_space<vmem>>, %arg8: memref<4x128xf32, #tpu.memory_space<vmem>>) attributes {dimension_semantics = [#tpu.dimension_semantics<arbitrary>], iteration_bounds = array<i64: 1>, scalar_prefetch = 0 : i64, scratch_operands = 0 : i64, tpu.core_type = #tpu.core_type<tc>, window_params = [{pipeline_mode = #tpu.pipeline_mode<synchronous>, transform_indices = @transform_0, window_bounds = array<i64: 16, 128>}, {pipeline_mode = #tpu.pipeline_mode<synchronous>, transform_indices = @transform_1, window_bounds = array<i64: 16, 16>}, {pipeline_mode = #tpu.pipeline_mode<synchronous>, transform_indices = @transform_2, window_bounds = array<i64: 4, 128>}, {pipeline_mode = #tpu.pipeline_mode<synchronous>, transform_indices = @transform_3, window_bounds = array<i64: 2, 128, 256>}, {pipeline_mode = #tpu.pipeline_mode<synchronous>, transform_indices = @transform_4, window_bounds = array<i64: 128, 128>}, {pipeline_mode = #tpu.pipeline_mode<synchronous>, transform_indices = @transform_5, window_bounds = array<i64: 128, 256>}, {pipeline_mode = #tpu.pipeline_mode<synchronous>, transform_indices = @transform_6, window_bounds = array<i64: 16, 128>}, {pipeline_mode = #tpu.pipeline_mode<synchronous>, transform_indices = @transform_7, window_bounds = array<i64: 4, 128>}]} {
    %c0 = arith.constant 0 : index
    %c0_0 = arith.constant 0 : index
    %0 = vector.load %arg2[%c0, %c0_0] : memref<16x16xf32, #tpu.memory_space<vmem>>, vector<16x16xf32>
    %1 = arith.truncf %0 : vector<16x16xf32> to vector<16x16xbf16>
    %c0_1 = arith.constant 0 : index
    %c0_2 = arith.constant 0 : index
    %2 = vector.load %arg5[%c0_1, %c0_2] : memref<128x128xbf16, #tpu.memory_space<vmem>>, vector<128x128xbf16>
    %c0_3 = arith.constant 0 : index
    %c0_4 = arith.constant 0 : index
    %3 = vector.load %arg6[%c0_3, %c0_4] : memref<128x256xbf16, #tpu.memory_space<vmem>>, vector<128x256xbf16>
    %c0_5 = arith.constant 0 : index
    %c0_6 = arith.constant 0 : index
    %4 = vector.load %arg1[%c0_5, %c0_6] : memref<16x128xf32, #tpu.memory_space<vmem>>, vector<16x128xf32>
    %c0_7 = arith.constant 0 : index
    %c0_8 = arith.constant 0 : index
    %5 = vector.load %arg3[%c0_7, %c0_8] : memref<4x128xf32, #tpu.memory_space<vmem>>, vector<4x128xf32>
    %6 = arith.truncf %4 : vector<16x128xf32> to vector<16x128xbf16>
    %c0_9 = arith.constant 0 : index
    %c0_10 = arith.constant 0 : index
    %c0_11 = arith.constant 0 : index
    %7 = vector.load %arg4[%c0_9, %c0_10, %c0_11] : memref<2x128x256xbf16, #tpu.memory_space<vmem>>, vector<1x128x256xbf16>
    %8 = vector.shape_cast %7 : vector<1x128x256xbf16> to vector<128x256xbf16>
    %cst = arith.constant dense<0.000000e+00> : vector<16x256xf32>
    %9 = tpu.matmul %6, %8, %cst {dimension_numbers = #tpu.dot_dimension_numbers<[1], [0], [0], [1], [0, 0, 1, 1], [], []>} : vector<16x128xbf16>, vector<128x256xbf16>, vector<16x256xf32> -> vector<16x256xf32>
    %10 = vector.extract_strided_slice %9 {offsets = [0, 0], sizes = [16, 128], strides = [1, 1]} : vector<16x256xf32> to vector<16x128xf32>
    %11 = vector.extract_strided_slice %9 {offsets = [0, 128], sizes = [16, 128], strides = [1, 1]} : vector<16x256xf32> to vector<16x128xf32>
    %12 = arith.truncf %10 : vector<16x128xf32> to vector<16x128xbf16>
    %cst_12 = arith.constant dense<0.000000e+00> : vector<16x128xf32>
    %13 = tpu.matmul %1, %12, %cst_12 {dimension_numbers = #tpu.dot_dimension_numbers<[1], [0], [0], [1], [0, 0, 1, 1], [], []>} : vector<16x16xbf16>, vector<16x128xbf16>, vector<16x128xf32> -> vector<16x128xf32>
    %14 = arith.addf %13, %11 : vector<16x128xf32>
    %cst_13 = arith.constant 0.000000e+00 : f32
    %15 = vector.broadcast %cst_13 : f32 to vector<16x128xf32>
    %16 = arith.subf %15, %14 : vector<16x128xf32>
    %17 = math.exp %16 : vector<16x128xf32>
    %cst_14 = arith.constant 1.000000e+00 : f32
    %18 = vector.broadcast %cst_14 : f32 to vector<16x128xf32>
    %19 = arith.addf %18, %17 : vector<16x128xf32>
    %cst_15 = arith.constant 1.000000e+00 : f32
    %20 = vector.broadcast %cst_15 : f32 to vector<16x128xf32>
    %21 = arith.divf %20, %19 : vector<16x128xf32>
    %22 = arith.mulf %14, %21 : vector<16x128xf32>
    %23 = arith.truncf %22 : vector<16x128xf32> to vector<16x128xbf16>
    %cst_16 = arith.constant dense<0.000000e+00> : vector<16x256xf32>
    %24 = tpu.matmul %23, %3, %cst_16 {dimension_numbers = #tpu.dot_dimension_numbers<[1], [0], [0], [1], [0, 0, 1, 1], [], []>} : vector<16x128xbf16>, vector<128x256xbf16>, vector<16x256xf32> -> vector<16x256xf32>
    %25 = vector.extract_strided_slice %24 {offsets = [0, 0], sizes = [16, 128], strides = [1, 1]} : vector<16x256xf32> to vector<16x128xf32>
    %26 = vector.extract_strided_slice %24 {offsets = [0, 128], sizes = [16, 128], strides = [1, 1]} : vector<16x256xf32> to vector<16x128xf32>
    %27 = arith.truncf %5 : vector<4x128xf32> to vector<4x128xbf16>
    %cst_17 = arith.constant dense<0.000000e+00> : vector<4x128xf32>
    %28 = tpu.matmul %27, %2, %cst_17 {dimension_numbers = #tpu.dot_dimension_numbers<[1], [0], [0], [1], [0, 0, 1, 1], [], []>} : vector<4x128xbf16>, vector<128x128xbf16>, vector<4x128xf32> -> vector<4x128xf32>
    %29 = arith.truncf %28 : vector<4x128xf32> to vector<4x128xbf16>
    %30 = arith.truncf %25 : vector<16x128xf32> to vector<16x128xbf16>
    %cst_18 = arith.constant dense<0.000000e+00> : vector<4x16xf32>
    %31 = tpu.matmul %29, %30, %cst_18 {dimension_numbers = #tpu.dot_dimension_numbers<[1], [1], [0], [0], [0, 0, 1, 0], [], []>} : vector<4x128xbf16>, vector<16x128xbf16>, vector<4x16xf32> -> vector<4x16xf32>
    %cst_19 = arith.constant dense<0xFF800000> : vector<4xf32>
    %32 = vector.multi_reduction <maximumf>, %31, %cst_19 [1] : vector<4x16xf32> to vector<4xf32>
    %33 = vector.shape_cast %32 : vector<4xf32> to vector<4x1xf32>
    %34 = vector.broadcast %33 : vector<4x1xf32> to vector<4x16xf32>
    %35 = arith.subf %31, %34 : vector<4x16xf32>
    %36 = math.exp %35 : vector<4x16xf32>
    %cst_20 = arith.constant dense<0.000000e+00> : vector<4xf32>
    %37 = vector.multi_reduction <add>, %36, %cst_20 [1] : vector<4x16xf32> to vector<4xf32>
    %38 = vector.shape_cast %37 : vector<4xf32> to vector<4x1xf32>
    %39 = vector.broadcast %38 : vector<4x1xf32> to vector<4x16xf32>
    %40 = arith.divf %36, %39 : vector<4x16xf32>
    %41 = arith.truncf %40 : vector<4x16xf32> to vector<4x16xbf16>
    %42 = arith.truncf %26 : vector<16x128xf32> to vector<16x128xbf16>
    %cst_21 = arith.constant dense<0.000000e+00> : vector<4x128xf32>
    %43 = tpu.matmul %41, %42, %cst_21 {dimension_numbers = #tpu.dot_dimension_numbers<[1], [0], [0], [1], [0, 0, 1, 1], [], []>} : vector<4x16xbf16>, vector<16x128xbf16>, vector<4x128xf32> -> vector<4x128xf32>
    %44 = arith.truncf %22 : vector<16x128xf32> to vector<16x128xbf16>
    %c1 = arith.constant 1 : index
    %c0_22 = arith.constant 0 : index
    %c0_23 = arith.constant 0 : index
    %45 = vector.load %arg4[%c1, %c0_22, %c0_23] : memref<2x128x256xbf16, #tpu.memory_space<vmem>>, vector<1x128x256xbf16>
    %46 = vector.shape_cast %45 : vector<1x128x256xbf16> to vector<128x256xbf16>
    %cst_24 = arith.constant dense<0.000000e+00> : vector<16x256xf32>
    %47 = tpu.matmul %44, %46, %cst_24 {dimension_numbers = #tpu.dot_dimension_numbers<[1], [0], [0], [1], [0, 0, 1, 1], [], []>} : vector<16x128xbf16>, vector<128x256xbf16>, vector<16x256xf32> -> vector<16x256xf32>
    %48 = vector.extract_strided_slice %47 {offsets = [0, 0], sizes = [16, 128], strides = [1, 1]} : vector<16x256xf32> to vector<16x128xf32>
    %49 = vector.extract_strided_slice %47 {offsets = [0, 128], sizes = [16, 128], strides = [1, 1]} : vector<16x256xf32> to vector<16x128xf32>
    %50 = arith.truncf %48 : vector<16x128xf32> to vector<16x128xbf16>
    %cst_25 = arith.constant dense<0.000000e+00> : vector<16x128xf32>
    %51 = tpu.matmul %1, %50, %cst_25 {dimension_numbers = #tpu.dot_dimension_numbers<[1], [0], [0], [1], [0, 0, 1, 1], [], []>} : vector<16x16xbf16>, vector<16x128xbf16>, vector<16x128xf32> -> vector<16x128xf32>
    %52 = arith.addf %51, %49 : vector<16x128xf32>
    %cst_26 = arith.constant 0.000000e+00 : f32
    %53 = vector.broadcast %cst_26 : f32 to vector<16x128xf32>
    %54 = arith.subf %53, %52 : vector<16x128xf32>
    %55 = math.exp %54 : vector<16x128xf32>
    %cst_27 = arith.constant 1.000000e+00 : f32
    %56 = vector.broadcast %cst_27 : f32 to vector<16x128xf32>
    %57 = arith.addf %56, %55 : vector<16x128xf32>
    %cst_28 = arith.constant 1.000000e+00 : f32
    %58 = vector.broadcast %cst_28 : f32 to vector<16x128xf32>
    %59 = arith.divf %58, %57 : vector<16x128xf32>
    %60 = arith.mulf %52, %59 : vector<16x128xf32>
    %61 = arith.truncf %60 : vector<16x128xf32> to vector<16x128xbf16>
    %cst_29 = arith.constant dense<0.000000e+00> : vector<16x256xf32>
    %62 = tpu.matmul %61, %3, %cst_29 {dimension_numbers = #tpu.dot_dimension_numbers<[1], [0], [0], [1], [0, 0, 1, 1], [], []>} : vector<16x128xbf16>, vector<128x256xbf16>, vector<16x256xf32> -> vector<16x256xf32>
    %63 = vector.extract_strided_slice %62 {offsets = [0, 0], sizes = [16, 128], strides = [1, 1]} : vector<16x256xf32> to vector<16x128xf32>
    %64 = vector.extract_strided_slice %62 {offsets = [0, 128], sizes = [16, 128], strides = [1, 1]} : vector<16x256xf32> to vector<16x128xf32>
    %65 = arith.truncf %43 : vector<4x128xf32> to vector<4x128xbf16>
    %cst_30 = arith.constant dense<0.000000e+00> : vector<4x128xf32>
    %66 = tpu.matmul %65, %2, %cst_30 {dimension_numbers = #tpu.dot_dimension_numbers<[1], [0], [0], [1], [0, 0, 1, 1], [], []>} : vector<4x128xbf16>, vector<128x128xbf16>, vector<4x128xf32> -> vector<4x128xf32>
    %67 = arith.truncf %66 : vector<4x128xf32> to vector<4x128xbf16>
    %68 = arith.truncf %63 : vector<16x128xf32> to vector<16x128xbf16>
    %cst_31 = arith.constant dense<0.000000e+00> : vector<4x16xf32>
    %69 = tpu.matmul %67, %68, %cst_31 {dimension_numbers = #tpu.dot_dimension_numbers<[1], [1], [0], [0], [0, 0, 1, 0], [], []>} : vector<4x128xbf16>, vector<16x128xbf16>, vector<4x16xf32> -> vector<4x16xf32>
    %cst_32 = arith.constant dense<0xFF800000> : vector<4xf32>
    %70 = vector.multi_reduction <maximumf>, %69, %cst_32 [1] : vector<4x16xf32> to vector<4xf32>
    %71 = vector.shape_cast %70 : vector<4xf32> to vector<4x1xf32>
    %72 = vector.broadcast %71 : vector<4x1xf32> to vector<4x16xf32>
    %73 = arith.subf %69, %72 : vector<4x16xf32>
    %74 = math.exp %73 : vector<4x16xf32>
    %cst_33 = arith.constant dense<0.000000e+00> : vector<4xf32>
    %75 = vector.multi_reduction <add>, %74, %cst_33 [1] : vector<4x16xf32> to vector<4xf32>
    %76 = vector.shape_cast %75 : vector<4xf32> to vector<4x1xf32>
    %77 = vector.broadcast %76 : vector<4x1xf32> to vector<4x16xf32>
    %78 = arith.divf %74, %77 : vector<4x16xf32>
    %79 = arith.truncf %78 : vector<4x16xf32> to vector<4x16xbf16>
    %80 = arith.truncf %64 : vector<16x128xf32> to vector<16x128xbf16>
    %cst_34 = arith.constant dense<0.000000e+00> : vector<4x128xf32>
    %81 = tpu.matmul %79, %80, %cst_34 {dimension_numbers = #tpu.dot_dimension_numbers<[1], [0], [0], [1], [0, 0, 1, 1], [], []>} : vector<4x16xbf16>, vector<16x128xbf16>, vector<4x128xf32> -> vector<4x128xf32>
    %c0_35 = arith.constant 0 : index
    %c0_36 = arith.constant 0 : index
    %82 = vector.load %arg7[%c0_35, %c0_36] : memref<16x128xf32, #tpu.memory_space<vmem>>, vector<16x128xf32>
    tpu.vector_store %arg7[%c0_35, %c0_36], %60 {strides = array<i32>} : memref<16x128xf32, #tpu.memory_space<vmem>>, vector<16x128xf32>,
    %c0_37 = arith.constant 0 : index
    %c0_38 = arith.constant 0 : index
    %83 = vector.load %arg8[%c0_37, %c0_38] : memref<4x128xf32, #tpu.memory_space<vmem>>, vector<4x128xf32>
    tpu.vector_store %arg8[%c0_37, %c0_38], %81 {strides = array<i32>} : memref<4x128xf32, #tpu.memory_space<vmem>>, vector<4x128xf32>,
    return
  }
  func.func @transform_0(%arg0: i32) -> (i32, i32) {
    %c0_i32 = arith.constant 0 : i32
    %c0_i32_0 = arith.constant 0 : i32
    %c0_i32_1 = arith.constant 0 : i32
    return %c0_i32, %c0_i32_0 : i32, i32
  }
  func.func @transform_1(%arg0: i32) -> (i32, i32) {
    %c0_i32 = arith.constant 0 : i32
    %c0_i32_0 = arith.constant 0 : i32
    %c0_i32_1 = arith.constant 0 : i32
    return %c0_i32, %c0_i32_0 : i32, i32
  }
  func.func @transform_2(%arg0: i32) -> (i32, i32) {
    %c0_i32 = arith.constant 0 : i32
    %c0_i32_0 = arith.constant 0 : i32
    %c0_i32_1 = arith.constant 0 : i32
    return %c0_i32, %c0_i32_0 : i32, i32
  }
  func.func @transform_3(%arg0: i32) -> (i32, i32, i32) {
    %c0_i32 = arith.constant 0 : i32
    %c0_i32_0 = arith.constant 0 : i32
    %c0_i32_1 = arith.constant 0 : i32
    %c0_i32_2 = arith.constant 0 : i32
    return %c0_i32, %c0_i32_0, %c0_i32_1 : i32, i32, i32
  }
  func.func @transform_4(%arg0: i32) -> (i32, i32) {
    %c0_i32 = arith.constant 0 : i32
    %c0_i32_0 = arith.constant 0 : i32
    %c0_i32_1 = arith.constant 0 : i32
    return %c0_i32, %c0_i32_0 : i32, i32
  }
  func.func @transform_5(%arg0: i32) -> (i32, i32) {
    %c0_i32 = arith.constant 0 : i32
    %c0_i32_0 = arith.constant 0 : i32
    %c0_i32_1 = arith.constant 0 : i32
    return %c0_i32, %c0_i32_0 : i32, i32
  }
  func.func @transform_6(%arg0: i32) -> (i32, i32) {
    %c0_i32 = arith.constant 0 : i32
    %c0_i32_0 = arith.constant 0 : i32
    %c0_i32_1 = arith.constant 0 : i32
    return %c0_i32, %c0_i32_0 : i32, i32
  }
  func.func @transform_7(%arg0: i32) -> (i32, i32) {
    %c0_i32 = arith.constant 0 : i32
    %c0_i32_0 = arith.constant 0 : i32
    %c0_i32_1 = arith.constant 0 : i32
    return %c0_i32, %c0_i32_0 : i32, i32
  }
}

</mosaic_0001>

<bundles_post_ra>
// kernel: _fused_forward.1
= control target key start
LH: loop header
LB: loop body
LE: loop exit
PB: predicated region body
PF: predicated region fallthrough
CT: control target
= control target key end

     0   :  { %13 = vsyncpa [#allocation3], 0  ;;  %s1729_s0 = inlined_call_operand.vmem [shape: f32[16,128], index: 0, kind: input, shape index: {}]   ;;  %s1730_s1 = inlined_call_operand.vmem [shape: f32[16,16], index: 1, kind: input, shape index: {}]   ;;  %s1731_s2 = inlined_call_operand.vmem [shape: f32[4,128], index: 2, kind: input, shape index: {}]   ;;  %s1732_s3 = inlined_call_operand.hbm [shape: bf16[2,128,256], index: 3, kind: input, shape index: {}]   ;;  %s1733_s4 = inlined_call_operand.hbm [shape: bf16[128,128], index: 4, kind: input, shape index: {}]   ;;  %s1734_s5 = inlined_call_operand.hbm [shape: bf16[128,256], index: 5, kind: input, shape index: {}]   ;;  %s1735_s6 = inlined_call_operand.hbm [shape: f32[16,128], index: 6, kind: output, shape index: {0}]   ;;  %s1736_s7 = inlined_call_operand.hbm [shape: f32[4,128], index: 7, kind: output, shape index: {1}]  }
   0x1   :  { %14 = vsyncpa [#allocation6], 0 }
   0x2   :  { %15 = vsyncpa [#allocation4], 0 }
   0x3   :  { %16 = vsyncpa [#allocation10], 0  ;;  %s1433_s24 = smov [#allocation5]   ;;  %s1315_s28 = scalar_lea.hbm %s1733_s4, 1024 }
   0x4   :  { %s40_s25 = sshll.u32 %s1433_s24, 4  ;;  %p1316_p0 = scmp.ne.s32.totalorder %s1733_s4, %s1315_s28  ;;  %s41_s25 = int_to_ptr.vmem [resolvable:$true] %s40_s25 }
   0x5   :  { %p1319_p1 = scmp.lt.u32.totalorder %s1315_s28, %s1733_s4 }
   0x7   :  { %p1321_p2 = pnand %p1319_p1, %p1316_p0 }
   0x9   :  { %1324 = shalt.err (!%p1321_p2)
}
   0xa   :  { %s1325_s10 = scalar_lea.vmem %s41_s25, 1024  ;;  %p1330_p4 = scmp.lt.s32.totalorder %s41_s25, %s41_s25 }
   0xb   :  { %p1326_p3 = scmp.ne.s32.totalorder %s41_s25, %s1325_s10  ;;  %p1331_p5 = scmp.lt.s32.totalorder %s1325_s10, %s1325_s10 }
   0xd   :  { %p1332_p6 = por %p1331_p5, %p1330_p4 }
   0xf   :  { %p1333_p7 = pnand %p1332_p6, %p1326_p3 }
  0x11   :  { %1336 = shalt.err (!%p1333_p7)
}
  0x12   :  { %s1434_s11 = smov 64   ;;  %s1435_s12 = smov 4  }
  0x13   :  { %46 = dma.hbm_to_vmem [thread:$0]  %s1733_s4, 1024, %s41_s25, [#allocation6], %s1434_s11, %s1434_s11, %s1435_s12  }
  0x14   :  { %s1436_s15 = smov [#allocation2]   ;;  %s1337_s19 = scalar_lea.hbm %s1732_s3, 4096 }
  0x15   :  { %s28_s16 = sshll.u32 %s1436_s15, 4  ;;  %p1338_p8 = scmp.ne.s32.totalorder %s1732_s3, %s1337_s19  ;;  %s29_s16 = int_to_ptr.vmem [resolvable:$true] %s28_s16 }
  0x16   :  { %p1341_p9 = scmp.lt.u32.totalorder %s1337_s19, %s1732_s3 }
  0x18   :  { %p1343_p10 = pnand %p1341_p9, %p1338_p8 }
  0x1a   :  { %1346 = shalt.err (!%p1343_p10)
}
  0x1b   :  { %s1347_s24 = scalar_lea.vmem %s29_s16, 4096  ;;  %p1352_p12 = scmp.lt.s32.totalorder %s29_s16, %s29_s16 }
  0x1c   :  { %p1348_p11 = scmp.ne.s32.totalorder %s29_s16, %s1347_s24  ;;  %p1353_p13 = scmp.lt.s32.totalorder %s1347_s24, %s1347_s24 }
  0x1e   :  { %p1354_p0 = por %p1353_p13, %p1352_p12 }
  0x20   :  { %p1355_p1 = pnand %p1354_p0, %p1348_p11 }
  0x22   :  { %1358 = shalt.err (!%p1355_p1)
}
  0x23   :  { %s1437_s4 = smov 128   ;;  %s1438_s25 = smov 8  }
  0x24   :  { %34 = dma.hbm_to_vmem [thread:$0]  %s1732_s3, 4096, %s29_s16, [#allocation3], %s1437_s4, %s1437_s4, %s1438_s25  }
  0x25   :  { %s1439_s28 = smov [#allocation7]   ;;  %s1359_s9 = scalar_lea.hbm %s1734_s5, 2048 }
  0x26   :  { %s52_s29 = sshll.u32 %s1439_s28, 4  ;;  %p1360_p2 = scmp.ne.s32.totalorder %s1734_s5, %s1359_s9  ;;  %s53_s29 = int_to_ptr.vmem [resolvable:$true] %s52_s29 }
  0x27   :  { %p1363_p3 = scmp.lt.u32.totalorder %s1359_s9, %s1734_s5 }
  0x29   :  { %p1365_p4 = pnand %p1363_p3, %p1360_p2 }
  0x2b   :  { %1368 = shalt.err (!%p1365_p4)
}
  0x2c   :  { %s1369_s14 = scalar_lea.vmem %s53_s29, 2048  ;;  %p1374_p6 = scmp.lt.s32.totalorder %s53_s29, %s53_s29 }
  0x2d   :  { %p1370_p5 = scmp.ne.s32.totalorder %s53_s29, %s1369_s14  ;;  %p1375_p7 = scmp.lt.s32.totalorder %s1369_s14, %s1369_s14 }
  0x2f   :  { %p1376_p8 = por %p1375_p7, %p1374_p6 }
  0x31   :  { %p1377_p9 = pnand %p1376_p8, %p1370_p5 }
  0x33   :  { %1380 = shalt.err (!%p1377_p9)
}
  0x34   :  { %58 = dma.hbm_to_vmem [thread:$0]  %s1734_s5, 2048, %s53_s29, [#allocation6], %s1437_s4, %s1437_s4, %s1438_s25  }
  0x35   :  { %1425 = dma.done.wait [#allocation3], 4096  }
  0x36   :  { %1426 = vsyncadd [#allocation3], 4294963200 }
  0x37   :  { %1427 = dma.done.wait [#allocation6], 3072  }
  0x38   :  { %1428 = vsyncadd [#allocation6], 4294964224  ;;  %v1440_v0 = vmov 0   ;;  %v1211_v1 = vld [vmem:[#allocation2 + $0x4] ss:$8 sps:$4 sm:$0xff]   ;;  %v105_v18 = vld [vmem:[%s1729_s0 + $0x8] sm:$0xff] }
  0x39   :  { %236 = vmatprep.mubr.bf16.mxu0 %v1440_v0  ;;  %v1213_v2 = vld [vmem:[#allocation2] ss:$8 sps:$4 sm:$0xff]   ;;  %204 = vmatprep.subr.bf16.mxu0 %v1211_v1  ;;  %v1214_v3 = vld [vmem:[#allocation2 + $0x14] ss:$8 sps:$4 sm:$0xff]   ;;  %v1216_v4 = vld [vmem:[#allocation2 + $0x10] ss:$8 sps:$4 sm:$0xff]  }
  0x3a   :  { %205 = vmatpush1.bf16.msra.mxu0 %v1213_v2  ;;  %v1217_v5 = vld [vmem:[#allocation2 + $0x24] ss:$8 sps:$4 sm:$0xff]   ;;  %v1219_v6 = vld [vmem:[#allocation2 + $0x20] ss:$8 sps:$4 sm:$0xff]   ;;  %v1220_v7 = vld [vmem:[#allocation2 + $0x34] ss:$8 sps:$4 sm:$0xff]  }
  0x3b   :  { %206 = vmatprep.subr.bf16.mxu0 %v1214_v3  ;;  %v1222_v8 = vld [vmem:[#allocation2 + $0x30] ss:$8 sps:$4 sm:$0xff]   ;;  %v1223_v9 = vld [vmem:[#allocation2 + $0x44] ss:$8 sps:$4 sm:$0xff]   ;;  %v1225_v10 = vld [vmem:[#allocation2 + $0x40] ss:$8 sps:$4 sm:$0xff]  }
  0x3c   :  { %v1226_v11 = vld [vmem:[#allocation2 + $0x54] ss:$8 sps:$4 sm:$0xff]   ;;  %v1228_v12 = vld [vmem:[#allocation2 + $0x50] ss:$8 sps:$4 sm:$0xff]   ;;  %v1229_v13 = vld [vmem:[#allocation2 + $0x64] ss:$8 sps:$4 sm:$0xff]  }
  0x3d   :  { %v1231_v14 = vld [vmem:[#allocation2 + $0x60] ss:$8 sps:$4 sm:$0xff]   ;;  %v1232_v15 = vld [vmem:[#allocation2 + $0x74] ss:$8 sps:$4 sm:$0xff]   ;;  %v1234_v16 = vld [vmem:[#allocation2 + $0x70] ss:$8 sps:$4 sm:$0xff]  }
  0x3e   :  { %207 = vmatpush1.bf16.msra.mxu0 %v1216_v4  ;;  %v104_v17 = vld [vmem:[%s1729_s0] sm:$0xff]  ;;  %v1441_v20 = vmov 0.0   ;;  %vm1442_vm0 = vmmov 0   ;;  %v70_v24 = vld [vmem:[%s1730_s1 + $0x8] sm:$0xff]  ;;  %vm248_vm1 = vcmask 130048   ;;  %v1567_v33 = vld [vmem:[#allocation5] sm:$0xff]  }
  0x3f   :  { %208 = vmatprep.subr.bf16.mxu0 %v1217_v5  ;;  %v107_v19 = vpack.c.bf16 %v105_v18, %v104_v17  ;;  %1123 = vmatprep.subr.bf16.mxu1 %v1441_v20  ;;  %v69_v23 = vld [vmem:[%s1730_s1] sm:$0xff]  ;;  %v1561_v31 = vld [vmem:[#allocation7 + $0x14] ss:$8 sps:$4 sm:$0xff]   ;;  %v1563_v32 = vld [vmem:[#allocation7 + $0x10] ss:$8 sps:$4 sm:$0xff]   ;;  %vm562_vm2 = vcmask 125952  }
  0x40   :  { %1125 = vmatprep.mubr.msk.bf16.mxu1 %vm1442_vm0, %v1441_v20  ;;  %v1550_v28 = vpack.c.bf16 %v70_v24, %v69_v23  ;;  %v1555_v29 = vld [vmem:[#allocation7 + $0x4] ss:$8 sps:$4 sm:$0xff]   ;;  %v1557_v30 = vld [vmem:[#allocation7] ss:$8 sps:$4 sm:$0xff]   ;;  %v1579_v37 = vld [vmem:[#allocation7 + $0x34] ss:$8 sps:$4 sm:$0xff]  }
  0x41   :  { %v1569_v34 = vld [vmem:[#allocation7 + $0x24] ss:$8 sps:$4 sm:$0xff]   ;;  %v1572_v35 = vld [vmem:[#allocation7 + $0x20] ss:$8 sps:$4 sm:$0xff]   ;;  %v1582_v38 = vld [vmem:[#allocation7 + $0x30] ss:$8 sps:$4 sm:$0xff]  }
  0x42   :  { %209 = vmatpush1.bf16.msra.mxu0 %v1219_v6  ;;  %v1577_v36 = vld [vmem:[#allocation5 + $0x8] sm:$0xff]   ;;  %v1587_v39 = vld [vmem:[#allocation5 + $0x10] sm:$0xff]   ;;  %v1597_v42 = vld [vmem:[#allocation5 + $0x18] sm:$0xff]  }
  0x43   :  { %210 = vmatprep.subr.bf16.mxu0 %v1220_v7  ;;  %v1589_v40 = vld [vmem:[#allocation7 + $0x44] ss:$8 sps:$4 sm:$0xff]   ;;  %v1592_v41 = vld [vmem:[#allocation7 + $0x40] ss:$8 sps:$4 sm:$0xff]   ;;  %v1599_v43 = vld [vmem:[#allocation7 + $0x54] ss:$8 sps:$4 sm:$0xff]  }
  0x44   :  { %v1602_v44 = vld [vmem:[#allocation7 + $0x50] ss:$8 sps:$4 sm:$0xff]   ;;  %v1607_v45 = vld [vmem:[#allocation5 + $0x20] sm:$0xff]   ;;  %v1617_v48 = vld [vmem:[#allocation5 + $0x28] sm:$0xff]  }
  0x45   :  { %v1609_v46 = vld [vmem:[#allocation7 + $0x64] ss:$8 sps:$4 sm:$0xff]   ;;  %v1612_v47 = vld [vmem:[#allocation7 + $0x60] ss:$8 sps:$4 sm:$0xff]   ;;  %v1619_v49 = vld [vmem:[#allocation7 + $0x74] ss:$8 sps:$4 sm:$0xff]  }
  0x46   :  { %211 = vmatpush1.bf16.msra.mxu0 %v1222_v8  ;;  %v1622_v50 = vld [vmem:[#allocation7 + $0x70] ss:$8 sps:$4 sm:$0xff]   ;;  %v106_v53 = vld [vmem:[%s1731_s2] sm:$0xf]  ;;  %s1443_s2 = smov [#allocation8]  }
  0x47   :  { %212 = vmatprep.subr.bf16.mxu0 %v1223_v9  ;;  %v1627_v51 = vld [vmem:[#allocation5 + $0x30] sm:$0xff]   ;;  %v1632_v52 = vld [vmem:[#allocation5 + $0x38] sm:$0xff]   ;;  %v431_v54 = vpack.c.bf16 %v106_v53, %v106_v53  ;;  %s1006_s23 = sshll.u32 %s1443_s2, 4  ;;  %s1007_s23 = int_to_ptr.vmem [resolvable:$true] %s1006_s23 }
  0x48   :  { %s1381_s24 = scalar_lea.vmem %s1007_s23, 256  ;;  %p1386_p11 = scmp.lt.s32.totalorder %s1007_s23, %s1007_s23 }
  0x49   :  { %p1382_p10 = scmp.ne.s32.totalorder %s1007_s23, %s1381_s24  ;;  %p1387_p12 = scmp.lt.s32.totalorder %s1381_s24, %s1381_s24 }
  0x4a   :  { %213 = vmatpush1.bf16.msra.mxu0 %v1225_v10 }
  0x4b   :  { %214 = vmatprep.subr.bf16.mxu0 %v1226_v11  ;;  %p1388_p13 = por %p1387_p12, %p1386_p11 }
  0x4d   :  { %p1389_p0 = pnand %p1388_p13, %p1382_p10 }
  0x4e   :  { %215 = vmatpush1.bf16.msra.mxu0 %v1228_v12 }
  0x4f   :  { %216 = vmatprep.subr.bf16.mxu0 %v1229_v13 }
  0x52   :  { %217 = vmatpush1.bf16.msra.mxu0 %v1231_v14 }
  0x53   :  { %218 = vmatprep.subr.bf16.mxu0 %v1232_v15 }
  0x56   :  { %219 = vmatpush1.bf16.msra.mxu0 %v1234_v16 }
  0x57   :  { %1129 = vmatprep.subr.bf16.mxu0 %v1441_v20 }
  0x59   :  { %237 = vmatmul.mubr.bf16.vlgmr.msra.gmra.mrb[0].mxu0 %v107_v19 }
  0x5a   :  { %1145 = vmatprep.mubr.msk.bf16.mxu0 %vm1442_vm0, %v1441_v20  ;;  %1130 = vmatpush3.bf16.msra.mxu0 %v1567_v33 }
  0x5b   :  { %1131 = vmatprep.subr.bf16.mxu0 %v1441_v20 }
  0x5e   :  { %1132 = vmatpush3.bf16.msra.mxu0 %v1577_v36 }
  0x5f   :  { %1133 = vmatprep.subr.bf16.mxu0 %v1441_v20 }
  0x62   :  { %1134 = vmatpush3.bf16.msra.mxu0 %v1587_v39 }
  0x63   :  { %1135 = vmatprep.subr.bf16.mxu0 %v1441_v20 }
  0x66   :  { %1136 = vmatpush3.bf16.msra.mxu0 %v1597_v42 }
  0x67   :  { %1137 = vmatprep.subr.bf16.mxu0 %v1441_v20 }
  0x6a   :  { %1138 = vmatpush3.bf16.msra.mxu0 %v1607_v45 }
  0x6b   :  { %1139 = vmatprep.subr.bf16.mxu0 %v1441_v20 }
  0x6e   :  { %1140 = vmatpush3.bf16.msra.mxu0 %v1617_v48 }
  0x6f   :  { %1141 = vmatprep.subr.bf16.mxu0 %v1441_v20 }
  0x72   :  { %1142 = vmatpush3.bf16.msra.mxu0 %v1627_v51 }
  0x73   :  { %1143 = vmatprep.subr.bf16.mxu0 %v1441_v20 }
  0x76   :  { %1144 = vmatpush3.bf16.msra.mxu0 %v1632_v52 }
  0x77   :  { %1161 = vmatprep.subr.bf16.mxu0 %v1441_v20 }
  0x79   :  { %1146 = vmatmul.mubr.bf16.vlgmr.msra.gmra.mrb[4].mxu0 %v431_v54 }
  0x7a   :  { %1163 = vmatprep.mubr.msk.bf16.mxu0 %vm1442_vm0, %v1441_v20 }
 0x12c   :  { %v238_v21 = vpop.f32.mrb[0].mxu0 }
 0x12d   :  { %v1540_v22 = vpop.f32.mrb[1].mxu0 }
 0x12e   :  { %v242_v25 = vpop.f32.mrb[2].mxu0 }
 0x12f   :  { %v247_v26 = vpack.c.bf16 %v242_v25, %v238_v21  ;;  %v1548_v27 = vpop.f32.mrb[3].mxu0 }
 0x131   :  { %1124 = vmatpush3.bf16.msra.mxu1 %v247_v26 }
 0x132   :  { %388 = vmatprep.subr.bf16.mxu1 %v1555_v29 }
 0x134   :  { %1126 = vmatmul.mubr.msk.bf16.vlgmr.msra.gmra.mrb[0].mxu1 %vm248_vm1, %v1550_v28 }
 0x135   :  { %420 = vmatprep.mubr.bf16.mxu1 %v1440_v0  ;;  %389 = vmatpush1.bf16.msra.mxu1 %v1557_v30 }
 0x136   :  { %390 = vmatprep.subr.bf16.mxu1 %v1561_v31 }
 0x139   :  { %391 = vmatpush1.bf16.msra.mxu1 %v1563_v32 }
 0x13a   :  { %392 = vmatprep.subr.bf16.mxu1 %v1569_v34 }
 0x13d   :  { %393 = vmatpush1.bf16.msra.mxu1 %v1572_v35 }
 0x13e   :  { %394 = vmatprep.subr.bf16.mxu1 %v1579_v37 }
 0x141   :  { %395 = vmatpush1.bf16.msra.mxu1 %v1582_v38 }
 0x142   :  { %396 = vmatprep.subr.bf16.mxu1 %v1589_v40 }
 0x145   :  { %397 = vmatpush1.bf16.msra.mxu1 %v1592_v41 }
 0x146   :  { %398 = vmatprep.subr.bf16.mxu1 %v1599_v43 }
 0x149   :  { %399 = vmatpush1.bf16.msra.mxu1 %v1602_v44 }
 0x14a   :  { %400 = vmatprep.subr.bf16.mxu1 %v1609_v46 }
 0x14c   :  { %v514_v11 = vpop.f32.mrb[4].mxu0 }
 0x14d   :  { %401 = vmatpush1.bf16.msra.mxu1 %v1612_v47  ;;  %v1147_v12 = vpop.f32.mrb[5].mxu0 }
 0x14e   :  { %402 = vmatprep.subr.bf16.mxu1 %v1619_v49  ;;  %v517_v13 = vpop.f32.mrb[6].mxu0  ;;  %v1287_v12 = vld [vmem:[#allocation2 + $0xe4] ss:$8 sps:$4 sm:$0xff]  }
 0x14f   :  { %v1148_v14 = vpop.f32.mrb[7].mxu0  ;;  %v1285_v13 = vld [vmem:[#allocation2 + $0xe0] ss:$8 sps:$4 sm:$0xff]  }
 0x150   :  { %v1290_v14 = vld [vmem:[#allocation2 + $0xf4] ss:$8 sps:$4 sm:$0xff]  }
 0x151   :  { %403 = vmatpush1.bf16.msra.mxu1 %v1622_v50 }
 0x152   :  { %1149 = vmatprep.subr.bf16.mxu1 %v1441_v20 }
 0x207   :  { %v286_v55 = vpop.f32.mrb[0].mxu1 }
 0x208   :  { %v287_v56 = vadd.f32 %v286_v55, %v1540_v22  ;;  %v1127_v57 = vpop.f32.mrb[1].mxu1  ;;  %v520_v22 = vpack.c.bf16 %v514_v11, %v514_v11  ;;  %v1282_v11 = vld [vmem:[#allocation2 + $0xd0] ss:$8 sps:$4 sm:$0xff]  }
 0x209   :  { %v289_v58 = vpop.f32.mrb[2].mxu1 }
 0x20a   :  { %v293_v59 = vsub.f32 0.0, %v287_v56  ;;  %v290_v60 = vadd.f32 %v289_v58, %v1548_v27  ;;  %v1128_v61 = vpop.f32.mrb[3].mxu1  ;;  %v1269_v58 = vld [vmem:[#allocation2 + $0x84] ss:$8 sps:$4 sm:$0xff]  }
 0x20c   :  { %v295_v62 = vmul.f32 1.442695, %v293_v59  ;;  %v294_v63 = vsub.f32 0.0, %v290_v60 }
 0x20e   :  { %1291 = vpow2.f32 %v295_v62  ;;  %v297_v1 = vmul.f32 1.442695, %v294_v63  ;;  %v1267_v62 = vld [vmem:[#allocation2 + $0x80] ss:$8 sps:$4 sm:$0xff]  }
 0x210   :  { %1293 = vpow2.f32 %v297_v1  ;;  %v1272_v1 = vld [vmem:[#allocation2 + $0x94] ss:$8 sps:$4 sm:$0xff]  }
 0x218   :  { %v1292_v2 = vpop.eup %1291 }
 0x219   :  { %v299_v3 = vadd.f32 1.0, %v1292_v2  ;;  %v1270_v2 = vld [vmem:[#allocation2 + $0x90] ss:$8 sps:$4 sm:$0xff]  }
 0x21a   :  { %v1294_v4 = vpop.eup %1293 }
 0x21b   :  { %1295 = vrcp.f32 %v299_v3  ;;  %v300_v5 = vadd.f32 1.0, %v1294_v4  ;;  %v1275_v3 = vld [vmem:[#allocation2 + $0xa4] ss:$8 sps:$4 sm:$0xff]   ;;  %v1273_v4 = vld [vmem:[#allocation2 + $0xa0] ss:$8 sps:$4 sm:$0xff]  }
 0x21d   :  { %1297 = vrcp.f32 %v300_v5  ;;  %v1278_v5 = vld [vmem:[#allocation2 + $0xb4] ss:$8 sps:$4 sm:$0xff]  }
 0x225   :  { %v1296_v6 = vpop.eup %1295 }
 0x226   :  { %v305_v8 = vmul.f32 %v1296_v6, %v287_v56  ;;  %v1276_v6 = vld [vmem:[#allocation2 + $0xb0] ss:$8 sps:$4 sm:$0xff]  }
 0x227   :  { %v1298_v7 = vpop.eup %1297 }
 0x228   :  { %v306_v9 = vmul.f32 %v1298_v7, %v290_v60  ;;  %v1281_v7 = vld [vmem:[#allocation2 + $0xc4] ss:$8 sps:$4 sm:$0xff]  }
 0x22a   :  { %v1643_v10 = vpack.c.bf16 %v306_v9, %v305_v8  ;;  %v1279_v8 = vld [vmem:[#allocation2 + $0xc0] ss:$8 sps:$4 sm:$0xff]   ;;  %v1284_v9 = vld [vmem:[#allocation2 + $0xd4] ss:$8 sps:$4 sm:$0xff]  }
 0x22c   :  { %421 = vmatmul.mubr.bf16.vlgmr.msra.gmra.mrb[4].mxu1 %v1643_v10 }
 0x22d   :  { %1151 = vmatprep.mubr.msk.bf16.mxu1 %vm1442_vm0, %v1441_v20 }
 0x2ff   :  { %v422_v15 = vpop.f32.mrb[4].mxu1 }
 0x300   :  { %v424_v16 = vpop.f32.mrb[5].mxu1 }
 0x301   :  { %v426_v17 = vpop.f32.mrb[6].mxu1 }
 0x302   :  { %v521_v18 = vpack.c.bf16 %v426_v17, %v422_v15  ;;  %v428_v19 = vpop.f32.mrb[7].mxu1  ;;  %v1288_v15 = vld [vmem:[#allocation2 + $0xf0] ss:$8 sps:$4 sm:$0xff]  }
 0x303   :  { %v575_v21 = vpack.c.bf16 %v428_v19, %v424_v16 }
 0x304   :  { %1150 = vmatpush3.bf16.xpose.msra.mxu1 %v521_v18 }
 0x305   :  { %1155 = vmatprep.subr.bf16.mxu1 %v1441_v20 }
 0x30b   :  { %1152 = vmatmul.mubr.bf16.vlgmr.msra.gmra.mrb[8].mxu1 %v520_v22 }
 0x30c   :  { %1156 = vmatpush3.bf16.msra.mxu1 %v575_v21  ;;  %1157 = vmatprep.mubr.msk.bf16.mxu1 %vm1442_vm0, %v1441_v20 }
 0x30d   :  { %716 = vmatprep.subr.bf16.mxu1 %v1269_v58 }
 0x3de   :  { %v556_v23 = vpop.f32.mrb[8].mxu1 }
 0x3df   :  { %v1153_v24 = vpop.f32.mrb[9].mxu1  ;;  %v563_v25 = vsel %vm562_vm2, %v556_v23, -inf }
 0x3e0   :  { %564 = vmax.xlane.f32.xlu0 %v563_v25  ;;  %v559_v26 = vpop.f32.mrb[10].mxu1 }
 0x3e1   :  { %v1154_v27 = vpop.f32.mrb[11].mxu1 }
 0x46d   :  { %v565_v53 = vpop.xlane.xlu0 %564 }
 0x46e   :  { %v566_v54 = vsub.f32 %v556_v23, %v565_v53 }
 0x470   :  { %v567_v55 = vmul.f32 1.442695, %v566_v54 }
 0x472   :  { %1299 = vpow2.f32 %v567_v55 }
 0x47c   :  { %v1300_v56 = vpop.eup %1299 }
 0x47d   :  { %v569_v57 = vsel %vm562_vm2, %v1300_v56, 0.0 }
 0x47e   :  { %570 = vadd.xlane.f32.xlu0 %v569_v57 }
 0x50b   :  { %v571_v59 = vpop.xlane.xlu0 %570 }
 0x50c   :  { %1301 = vrcp.f32 %v571_v59 }
 0x516   :  { %v1302_v60 = vpop.eup %1301 }
 0x517   :  { %v573_v61 = vmul.f32 %v1302_v60, %v1300_v56 }
 0x519   :  { %v574_v63 = vpack.c.bf16 %v573_v61, %v573_v61 }
 0x51b   :  { %1158 = vmatmul.mubr.msk.bf16.vlgmr.msra.gmra.mrb[12].mxu1 %vm248_vm1, %v574_v63 }
 0x51c   :  { %717 = vmatpush1.bf16.msra.mxu1 %v1267_v62  ;;  %748 = vmatprep.mubr.bf16.mxu1 %v1440_v0 }
 0x51d   :  { %718 = vmatprep.subr.bf16.mxu1 %v1272_v1 }
 0x520   :  { %719 = vmatpush1.bf16.msra.mxu1 %v1270_v2 }
 0x521   :  { %720 = vmatprep.subr.bf16.mxu1 %v1275_v3 }
 0x524   :  { %721 = vmatpush1.bf16.msra.mxu1 %v1273_v4 }
 0x525   :  { %722 = vmatprep.subr.bf16.mxu1 %v1278_v5 }
 0x528   :  { %723 = vmatpush1.bf16.msra.mxu1 %v1276_v6 }
 0x529   :  { %724 = vmatprep.subr.bf16.mxu1 %v1281_v7 }
 0x52c   :  { %725 = vmatpush1.bf16.msra.mxu1 %v1279_v8 }
 0x52d   :  { %726 = vmatprep.subr.bf16.mxu1 %v1284_v9 }
 0x530   :  { %727 = vmatpush1.bf16.msra.mxu1 %v1282_v11 }
 0x531   :  { %728 = vmatprep.subr.bf16.mxu1 %v1287_v12 }
 0x534   :  { %729 = vmatpush1.bf16.msra.mxu1 %v1285_v13 }
 0x535   :  { %730 = vmatprep.subr.bf16.mxu1 %v1290_v14 }
 0x538   :  { %731 = vmatpush1.bf16.msra.mxu1 %v1288_v15 }
 0x539   :  { %1167 = vmatprep.subr.bf16.mxu1 %v1441_v20 }
 0x53b   :  { %749 = vmatmul.mubr.bf16.vlgmr.msra.gmra.mrb[16].mxu1 %v1643_v10 }
 0x53c   :  { %1168 = vmatpush3.bf16.msra.mxu1 %v1567_v33  ;;  %1183 = vmatprep.mubr.msk.bf16.mxu1 %vm1442_vm0, %v1441_v20 }
 0x53d   :  { %1169 = vmatprep.subr.bf16.mxu1 %v1441_v20 }
 0x540   :  { %1170 = vmatpush3.bf16.msra.mxu1 %v1577_v36 }
 0x541   :  { %1171 = vmatprep.subr.bf16.mxu1 %v1441_v20 }
 0x544   :  { %1172 = vmatpush3.bf16.msra.mxu1 %v1587_v39 }
 0x545   :  { %1173 = vmatprep.subr.bf16.mxu1 %v1441_v20 }
 0x548   :  { %1174 = vmatpush3.bf16.msra.mxu1 %v1597_v42 }
 0x549   :  { %1175 = vmatprep.subr.bf16.mxu1 %v1441_v20 }
 0x54c   :  { %1176 = vmatpush3.bf16.msra.mxu1 %v1607_v45 }
 0x54d   :  { %1177 = vmatprep.subr.bf16.mxu1 %v1441_v20 }
 0x550   :  { %1178 = vmatpush3.bf16.msra.mxu1 %v1617_v48 }
 0x551   :  { %1179 = vmatprep.subr.bf16.mxu1 %v1441_v20 }
 0x554   :  { %1180 = vmatpush3.bf16.msra.mxu1 %v1627_v51 }
 0x555   :  { %1181 = vmatprep.subr.bf16.mxu1 %v1441_v20 }
 0x558   :  { %1182 = vmatpush3.bf16.msra.mxu1 %v1632_v52 }
 0x5ee   :  { %v613_v33 = vpop.f32.mrb[12].mxu1 }
 0x5ef   :  { %v859_v36 = vpack.c.bf16 %v613_v33, %v613_v33  ;;  %v1159_v39 = vpop.f32.mrb[13].mxu1 }
 0x5f0   :  { %v616_v42 = vpop.f32.mrb[14].mxu1 }
 0x5f1   :  { %v1160_v10 = vpop.f32.mrb[15].mxu1  ;;  %1184 = vmatmul.mubr.bf16.vlgmr.msra.gmra.mrb[20].mxu1 %v859_v36 }
 0x60e   :  { %v750_v16 = vpop.f32.mrb[16].mxu1 }
 0x60f   :  { %v752_v45 = vpop.f32.mrb[17].mxu1 }
 0x610   :  { %v754_v17 = vpop.f32.mrb[18].mxu1 }
 0x611   :  { %v759_v18 = vpack.c.bf16 %v754_v17, %v750_v16  ;;  %v756_v19 = vpop.f32.mrb[19].mxu1 }
 0x613   :  { %1162 = vmatpush3.bf16.msra.mxu0 %v759_v18 }
 0x614   :  { %816 = vmatprep.subr.bf16.mxu0 %v1555_v29 }
 0x616   :  { %1164 = vmatmul.mubr.msk.bf16.vlgmr.msra.gmra.mrb[8].mxu0 %vm248_vm1, %v1550_v28 }
 0x617   :  { %817 = vmatpush1.bf16.msra.mxu0 %v1557_v30  ;;  %848 = vmatprep.mubr.bf16.mxu0 %v1440_v0 }
 0x618   :  { %818 = vmatprep.subr.bf16.mxu0 %v1561_v31 }
 0x61b   :  { %819 = vmatpush1.bf16.msra.mxu0 %v1563_v32 }
 0x61c   :  { %820 = vmatprep.subr.bf16.mxu0 %v1569_v34 }
 0x61f   :  { %821 = vmatpush1.bf16.msra.mxu0 %v1572_v35 }
 0x620   :  { %822 = vmatprep.subr.bf16.mxu0 %v1579_v37 }
 0x623   :  { %823 = vmatpush1.bf16.msra.mxu0 %v1582_v38 }
 0x624   :  { %824 = vmatprep.subr.bf16.mxu0 %v1589_v40 }
 0x627   :  { %825 = vmatpush1.bf16.msra.mxu0 %v1592_v41 }
 0x628   :  { %826 = vmatprep.subr.bf16.mxu0 %v1599_v43 }
 0x62b   :  { %827 = vmatpush1.bf16.msra.mxu0 %v1602_v44 }
 0x62c   :  { %828 = vmatprep.subr.bf16.mxu0 %v1609_v46 }
 0x62f   :  { %829 = vmatpush1.bf16.msra.mxu0 %v1612_v47 }
 0x630   :  { %830 = vmatprep.subr.bf16.mxu0 %v1619_v49 }
 0x633   :  { %831 = vmatpush1.bf16.msra.mxu0 %v1622_v50 }
 0x634   :  { %1187 = vmatprep.subr.bf16.mxu0 %v1441_v20 }
 0x6c4   :  { %v894_v0 = vpop.f32.mrb[20].mxu1 }
 0x6c5   :  { %v1185_v28 = vpop.f32.mrb[21].mxu1  ;;  %v900_v54 = vpack.c.bf16 %v894_v0, %v894_v0 }
 0x6c6   :  { %v897_v29 = vpop.f32.mrb[22].mxu1 }
 0x6c7   :  { %v1186_v30 = vpop.f32.mrb[23].mxu1 }
 0x6e9   :  { %v794_v31 = vpop.f32.mrb[8].mxu0 }
 0x6ea   :  { %v795_v32 = vadd.f32 %v794_v31, %v752_v45  ;;  %v1165_v34 = vpop.f32.mrb[9].mxu0 }
 0x6eb   :  { %v797_v35 = vpop.f32.mrb[10].mxu0 }
 0x6ec   :  { %v801_v37 = vsub.f32 0.0, %v795_v32  ;;  %v798_v38 = vadd.f32 %v797_v35, %v756_v19  ;;  %v1166_v40 = vpop.f32.mrb[11].mxu0 }
 0x6ee   :  { %v803_v41 = vmul.f32 1.442695, %v801_v37  ;;  %v802_v43 = vsub.f32 0.0, %v798_v38 }
 0x6f0   :  { %1303 = vpow2.f32 %v803_v41  ;;  %v805_v44 = vmul.f32 1.442695, %v802_v43 }
 0x6f2   :  { %1305 = vpow2.f32 %v805_v44 }
 0x6fa   :  { %v1304_v46 = vpop.eup %1303 }
 0x6fb   :  { %v807_v47 = vadd.f32 1.0, %v1304_v46 }
 0x6fc   :  { %v1306_v48 = vpop.eup %1305 }
 0x6fd   :  { %1307 = vrcp.f32 %v807_v47  ;;  %v808_v49 = vadd.f32 1.0, %v1306_v48 }
 0x6ff   :  { %1309 = vrcp.f32 %v808_v49 }
 0x707   :  { %v1308_v50 = vpop.eup %1307 }
 0x708   :  { %v813_v51 = vmul.f32 %v1308_v50, %v795_v32 }
 0x709   :  { %v1310_v52 = vpop.eup %1309 }
 0x70a   :  { %998 = vst [vmem:[#allocation8] sm:$0xff] %v813_v51  ;;  %v814_v21 = vmul.f32 %v1310_v52, %v798_v38 }
 0x70c   :  { %v815_v22 = vpack.c.bf16 %v814_v21, %v813_v51  ;;  %999 = vst [vmem:[#allocation8 + $0x8] sm:$0xff] %v814_v21 }
 0x70e   :  { %849 = vmatmul.mubr.bf16.vlgmr.msra.gmra.mrb[12].mxu0 %v815_v22 }
 0x70f   :  { %1189 = vmatprep.mubr.msk.bf16.mxu0 %vm1442_vm0, %v1441_v20 }
 0x7e1   :  { %v850_v23 = vpop.f32.mrb[12].mxu0 }
 0x7e2   :  { %v852_v24 = vpop.f32.mrb[13].mxu0 }
 0x7e3   :  { %v854_v25 = vpop.f32.mrb[14].mxu0 }
 0x7e4   :  { %v901_v26 = vpack.c.bf16 %v854_v25, %v850_v23  ;;  %v856_v27 = vpop.f32.mrb[15].mxu0 }
 0x7e5   :  { %v954_v53 = vpack.c.bf16 %v856_v27, %v852_v24 }
 0x7e6   :  { %1188 = vmatpush3.bf16.xpose.msra.mxu0 %v901_v26 }
 0x7e7   :  { %1193 = vmatprep.subr.bf16.mxu0 %v1441_v20 }
 0x7ed   :  { %1190 = vmatmul.mubr.bf16.vlgmr.msra.gmra.mrb[16].mxu0 %v900_v54 }
 0x7ee   :  { %1194 = vmatpush3.bf16.msra.mxu0 %v954_v53  ;;  %1195 = vmatprep.mubr.msk.bf16.mxu0 %vm1442_vm0, %v1441_v20 }
 0x8c0   :  { %v936_v55 = vpop.f32.mrb[16].mxu0 }
 0x8c1   :  { %v1191_v56 = vpop.f32.mrb[17].mxu0  ;;  %v942_v57 = vsel %vm562_vm2, %v936_v55, -inf }
 0x8c2   :  { %943 = vmax.xlane.f32.xlu1 %v942_v57  ;;  %v939_v58 = vpop.f32.mrb[18].mxu0 }
 0x8c3   :  { %v1192_v59 = vpop.f32.mrb[19].mxu0 }
 0x94f   :  { %v944_v60 = vpop.xlane.xlu1 %943 }
 0x950   :  { %v945_v61 = vsub.f32 %v936_v55, %v944_v60 }
 0x952   :  { %v946_v62 = vmul.f32 1.442695, %v945_v61 }
 0x954   :  { %1311 = vpow2.f32 %v946_v62 }
 0x95e   :  { %v1312_v63 = vpop.eup %1311 }
 0x95f   :  { %v948_v1 = vsel %vm562_vm2, %v1312_v63, 0.0 }
 0x960   :  { %949 = vadd.xlane.f32.xlu1 %v948_v1 }
 0x9ed   :  { %v950_v2 = vpop.xlane.xlu1 %949 }
 0x9ee   :  { %1313 = vrcp.f32 %v950_v2 }
 0x9f8   :  { %v1314_v3 = vpop.eup %1313 }
 0x9f9   :  { %v952_v4 = vmul.f32 %v1314_v3, %v1312_v63 }
 0x9fb   :  { %v953_v20 = vpack.c.bf16 %v952_v4, %v952_v4 }
 0x9fd   :  { %1196 = vmatmul.mubr.msk.bf16.vlgmr.msra.gmra.mrb[20].mxu0 %vm248_vm1, %v953_v20 }
 0x9fe   :  { %1392 = shalt.err (!%p1389_p0)
}
 0x9ff   :  { %s1393_s28 = scalar_lea.hbm %s1735_s6, 256 }
 0xa00   :  { %p1394_p1 = scmp.ne.s32.totalorder %s1735_s6, %s1393_s28  ;;  %p1397_p2 = scmp.lt.u32.totalorder %s1393_s28, %s1735_s6 }
 0xa02   :  { %p1399_p3 = pnand %p1397_p2, %p1394_p1 }
 0xa04   :  { %1402 = shalt.err (!%p1399_p3)
}
 0xa05   :  { %1012 = dma.vmem_to_hbm [thread:$0]  %s1007_s23, 256, %s1735_s6, [#allocation4], %s1437_s4, %s1437_s4, %s1438_s25  }
 0xa06   :  { %s1444_s12 = smov [#allocation9]  }
 0xa07   :  { %s1019_s13 = sshll.u32 %s1444_s12, 4  ;;  %s1020_s13 = int_to_ptr.vmem [resolvable:$true] %s1019_s13 }
 0xa08   :  { %s1403_s14 = scalar_lea.vmem %s1020_s13, 64  ;;  %p1408_p5 = scmp.lt.s32.totalorder %s1020_s13, %s1020_s13 }
 0xa09   :  { %p1404_p4 = scmp.ne.s32.totalorder %s1020_s13, %s1403_s14  ;;  %p1409_p6 = scmp.lt.s32.totalorder %s1403_s14, %s1403_s14 }
 0xa0b   :  { %p1410_p7 = por %p1409_p6, %p1408_p5 }
 0xa0d   :  { %p1411_p8 = pnand %p1410_p7, %p1404_p4 }
 0xad0   :  { %v992_v5 = vpop.f32.mrb[20].mxu0 }
 0xad1   :  { %1000 = vst [vmem:[#allocation9] sm:$0xf] %v992_v5  ;;  %v1197_v6 = vpop.f32.mrb[21].mxu0 }
 0xad2   :  { %v995_v7 = vpop.f32.mrb[22].mxu0 }
 0xad3   :  { %1414 = shalt.err (!%p1411_p8)
}
 0xad4   :  { %s1415_s5 = scalar_lea.hbm %s1736_s7, 64 }
 0xad5   :  { %p1416_p9 = scmp.ne.s32.totalorder %s1736_s7, %s1415_s5  ;;  %p1419_p10 = scmp.lt.u32.totalorder %s1415_s5, %s1736_s7 }
 0xad7   :  { %p1421_p11 = pnand %p1419_p10, %p1416_p9 }
 0xad9   :  { %1424 = shalt.err (!%p1421_p11)
}
 0xada   :  { %1022 = dma.vmem_to_hbm [thread:$0]  %s1020_s13, 64, %s1736_s7, [#allocation10]   ;;  %v1198_v8 = vpop.f32.mrb[23].mxu0 }
 0xadb   :  { %1429 = dma.done.wait [#allocation4], 256  }
 0xadc   :  { %1430 = vsyncadd [#allocation4], 4294967040 }
 0xadd   :  { %1431 = dma.done.wait [#allocation10], 64  }
 0xade   :  { %1432 = vsyncadd [#allocation10], 4294967232 }
 0xadf   :  { %1029 = vsyncpa [#allocation3], 1 }
 0xae0   :  { %1030 = vsyncpa [#allocation6], 1 }
 0xae1   :  { %1031 = vsyncpa [#allocation4], 1 }
 0xae2   :  { %1032 = vsyncpa [#allocation10], 1 }

</bundles_post_ra>
